<compile_context>
chip_gen: v7x
topology: tpu7x:2x2x1
jax: 0.10.0
libtpu: 0.0.40
codegen_flags: <defaults>
</compile_context>

<pallas_src>
import functools
import math

import jax
import jax.numpy as jnp
from jax.experimental import pallas as pl
from jax.experimental.pallas import tpu as pltpu


def _pos_enc_kernel(t_ref, div_ref, phase_ref, out_ref, *, k_pack, d_emb, exact_cos):
    """Compute one (tR, Dp) lane-dense output tile, Dp = k_pack * d_emb.

    t_ref:     (tR, k_pack) f32  k_pack consecutive positions per packed row
    div_ref:   (1, Dp)      f32  interleaved freqs [f0,f0,f1,f1,...] tiled k_pack times
    phase_ref: (1, Dp)      f32  [0, pi/2, 0, pi/2, ...]
    out_ref:   (tR, Dp)     f32
    """
    rows = t_ref.shape[0]
    t = t_ref[...]
    if k_pack == 1:
        t_exp = t                                  # (tR, 1) broadcasts against (1, Dp)
    else:
        # Lane-expand so t_exp[:, k*d_emb + c] == t[:, k].  The broadcasts and the
        # lane concatenate are cheap compared to the sin() polynomial, and they let
        # the polynomial + the stores run fully lane-dense.
        pieces = [jnp.broadcast_to(t[:, k:k + 1], (rows, d_emb)) for k in range(k_pack)]
        t_exp = jnp.concatenate(pieces, axis=-1)   # (tR, Dp)
    x = t_exp * div_ref[...]
    if exact_cos:
        # Exact cos on odd channels (2x polynomial cost, no phase-add rounding).
        out_ref[...] = jnp.where(phase_ref[...] == 0.0, jnp.sin(x), jnp.cos(x))
    else:
        # cos(x) == sin(x + pi/2); argument rounding error ~ |x| * 2^-24.
        out_ref[...] = jnp.sin(x + phase_ref[...])


def _choose_row_tile(n_rows: int, out_row_bytes: int, t_row_bytes: int,
                     budget_bytes: int = 16 * 1024 * 1024) -> int:
    """Rows per grid step, budgeting the double-buffered (t + out) working set."""
    per_row = 2 * (out_row_bytes + t_row_bytes)        # double-buffered in + out
    rows = max(8, budget_bytes // per_row)
    # Keep >= 4 grid steps when there is enough work, so both v7x TensorCores get
    # >= 2 pipelined iterations each under dimension_semantics=("parallel",).
    if n_rows >= 4 * 1024:
        quarter = -(-n_rows // 4)
        rows = min(rows, max(1024, ((quarter + 7) // 8) * 8))
    if rows >= n_rows:
        return n_rows                                  # full-dim block is always legal
    return max(8, (rows // 8) * 8)                     # sublane dim multiple of 8


def positional_encoding(t: jax.Array, d_emb: int, norm: float = 10000.0,
                        *, exact_cos: bool = False) -> jax.Array:
    """t: (B, S) -> (B, S, d_emb) float32 positional encoding (PyTorch-equivalent)."""
    if d_emb % 2 != 0:
        raise ValueError("d_emb must be even (matches the PyTorch reference).")
    B, S = t.shape
    N = B * S

    # Lane packing factor: pack K consecutive positions per output row so that the
    # packed channel dim Dp = K*d_emb is a multiple of 128 (lane-dense stores).
    if d_emb < 128 and 128 % d_emb == 0:
        k_pack = 128 // d_emb
    else:
        # TODO(synk): d_emb < 128 that does not divide 128 keeps the plain
        # (N, d_emb) layout and therefore partially masked lane stores.
        k_pack = 1
    dp = k_pack * d_emb

    # Per-channel frequency and phase (tiny resident (1, Dp) arrays).
    half = jnp.exp(jnp.arange(0, d_emb, 2, dtype=jnp.float32)
                   * (-math.log(norm) / d_emb))                          # (d_emb/2,)
    div = jnp.tile(jnp.repeat(half, 2), k_pack)[None, :]                 # (1, Dp)
    phase = jnp.tile(jnp.asarray([0.0, math.pi / 2.0], jnp.float32),
                     dp // 2)[None, :]                                   # (1, Dp)

    # Pack t: (B, S) -> (n_rows, k_pack); pad the tail only if N % k_pack != 0.
    n_pad = -(-N // k_pack) * k_pack
    t_flat = t.reshape(-1).astype(jnp.float32)
    if n_pad != N:
        t_flat = jnp.pad(t_flat, (0, n_pad - N))
    n_rows = n_pad // k_pack
    t_packed = t_flat.reshape(n_rows, k_pack)

    out_row_bytes = dp * 4
    t_row_bytes = 128 * 4          # the (tR, k_pack) f32 block is lane-padded to 128
    tile_rows = _choose_row_tile(n_rows, out_row_bytes, t_row_bytes)
    grid = (pl.cdiv(n_rows, tile_rows),)

    # Real double-buffered working set (incl. lane-padded t) + headroom.  Explicit
    # so we never rely on (or exceed) the per-generation scoped-VMEM default.
    working_set = 2 * tile_rows * (out_row_bytes + t_row_bytes) + 4 * dp * 4
    vmem_limit = int(min(56 << 20, max(working_set + (4 << 20), 16 << 20)))

    kernel = functools.partial(_pos_enc_kernel, k_pack=k_pack, d_emb=d_emb,
                               exact_cos=exact_cos)

    out = pl.pallas_call(
        kernel,
        out_shape=jax.ShapeDtypeStruct((n_rows, dp), jnp.float32),
        grid_spec=pltpu.PrefetchScalarGridSpec(
            num_scalar_prefetch=0,
            grid=grid,
            in_specs=[
                pl.BlockSpec((tile_rows, k_pack), lambda i: (i, 0)),   # t (streams)
                pl.BlockSpec((1, dp), lambda i: (0, 0)),               # div (resident)
                pl.BlockSpec((1, dp), lambda i: (0, 0)),               # phase (resident)
            ],
            out_specs=pl.BlockSpec((tile_rows, dp), lambda i: (i, 0)),
        ),
        compiler_params=pltpu.CompilerParams(
            dimension_semantics=("parallel",),
            vmem_limit_bytes=vmem_limit,
        ),
    )(t_packed, div, phase)

    # (n_rows, k_pack*d_emb) -> (n_pad, d_emb) is a free row-major reshape.
    out = out.reshape(n_pad, d_emb)
    if n_pad != N:
        out = out[:N]
    return out.reshape(B, S, d_emb)


def _reference(t, d_emb, norm=10000.0):
    """Pure-JAX reference mirroring the PyTorch module."""
    B, S = t.shape
    div_term = jnp.exp(jnp.arange(0, d_emb, 2, dtype=jnp.float32)
                       * (-math.log(norm) / d_emb))[None, None, :]
    tt = t[:, :, None].astype(jnp.float32)
    pe = jnp.zeros((B, S, d_emb), jnp.float32)
    pe = pe.at[:, :, 0::2].set(jnp.sin(tt * div_term))
    pe = pe.at[:, :, 1::2].set(jnp.cos(tt * div_term))
    return pe


if __name__ == "__main__":
    key = jax.random.PRNGKey(0)
    B, S, D = 2, 8, 32
    # "t" plays the role of (possibly continuous) positions / timesteps.
    t = jax.random.uniform(key, (B, S), dtype=jnp.float32, minval=0.0, maxval=100.0)

    pe = positional_encoding(t, d_emb=D, norm=10000.0)
    jax.block_until_ready(pe)
    ref = _reference(t, D)
    assert pe.shape == (B, S, D), pe.shape
    # sin(x + pi/2) perturbs the argument by ~ulp(x); at t <= 100 this is < 3e-5.
    assert jnp.allclose(pe, ref, atol=3e-5, rtol=1e-5), float(jnp.max(jnp.abs(pe - ref)))

    # Exact-cos variant (no phase-add trick).
    pe_x = positional_encoding(t, d_emb=D, exact_cos=True)
    jax.block_until_ready(pe_x)
    assert jnp.allclose(pe_x, ref, atol=1e-5, rtol=1e-5)

    # Ragged packing path (N % k_pack != 0).
    t2 = jax.random.uniform(jax.random.PRNGKey(1), (3, 3), dtype=jnp.float32,
                            minval=0.0, maxval=100.0)
    assert jnp.allclose(positional_encoding(t2, 32), _reference(t2, 32),
                        atol=3e-5, rtol=1e-5)

    # k_pack == 1 path (d_emb >= 128, already lane-dense).
    t3 = jax.random.uniform(jax.random.PRNGKey(2), (2, 8), dtype=jnp.float32,
                            minval=0.0, maxval=100.0)
    assert jnp.allclose(positional_encoding(t3, 128), _reference(t3, 128),
                        atol=3e-5, rtol=1e-5)

    print("KERNEL_OK")
</pallas_src>

<mosaic_0001>
module attributes {stable_mosaic.version = 11 : i64} {
  func.func @_pos_enc_kernel(%arg0: i32, %arg1: memref<4x4xf32, #tpu.memory_space<vmem>>, %arg2: memref<1x128xf32, #tpu.memory_space<vmem>>, %arg3: memref<1x128xf32, #tpu.memory_space<vmem>>, %arg4: memref<4x128xf32, #tpu.memory_space<vmem>>) attributes {dimension_semantics = [#tpu.dimension_semantics<parallel>], iteration_bounds = array<i64: 1>, scalar_prefetch = 0 : i64, scratch_operands = 0 : i64, tpu.core_type = #tpu.core_type<tc>, window_params = [{transform_indices = @transform_0, window_bounds = array<i64: 4, 4>}, {pipeline_mode = #tpu.pipeline_mode<synchronous>, transform_indices = @transform_1, window_bounds = array<i64: 1, 128>}, {pipeline_mode = #tpu.pipeline_mode<synchronous>, transform_indices = @transform_2, window_bounds = array<i64: 1, 128>}, {transform_indices = @transform_3, window_bounds = array<i64: 4, 128>}]} {
    %c0 = arith.constant 0 : index
    %c0_0 = arith.constant 0 : index
    %0 = vector.load %arg1[%c0, %c0_0] : memref<4x4xf32, #tpu.memory_space<vmem>>, vector<4x4xf32>
    %1 = vector.extract_strided_slice %0 {offsets = [0, 0], sizes = [4, 1], strides = [1, 1]} : vector<4x4xf32> to vector<4x1xf32>
    %2 = vector.shape_cast %1 : vector<4x1xf32> to vector<4x1xf32>
    %3 = vector.broadcast %2 : vector<4x1xf32> to vector<4x32xf32>
    %4 = vector.extract_strided_slice %0 {offsets = [0, 1], sizes = [4, 1], strides = [1, 1]} : vector<4x4xf32> to vector<4x1xf32>
    %5 = vector.shape_cast %4 : vector<4x1xf32> to vector<4x1xf32>
    %6 = vector.broadcast %5 : vector<4x1xf32> to vector<4x32xf32>
    %7 = vector.extract_strided_slice %0 {offsets = [0, 2], sizes = [4, 1], strides = [1, 1]} : vector<4x4xf32> to vector<4x1xf32>
    %8 = vector.shape_cast %7 : vector<4x1xf32> to vector<4x1xf32>
    %9 = vector.broadcast %8 : vector<4x1xf32> to vector<4x32xf32>
    %10 = vector.extract_strided_slice %0 {offsets = [0, 3], sizes = [4, 1], strides = [1, 1]} : vector<4x4xf32> to vector<4x1xf32>
    %11 = vector.shape_cast %10 : vector<4x1xf32> to vector<4x1xf32>
    %12 = vector.broadcast %11 : vector<4x1xf32> to vector<4x32xf32>
    %13 = tpu.concatenate %3, %6, %9, %12 in 1 : vector<4x32xf32>, vector<4x32xf32>, vector<4x32xf32>, vector<4x32xf32> -> vector<4x128xf32>
    %c0_1 = arith.constant 0 : index
    %c0_2 = arith.constant 0 : index
    %14 = vector.load %arg2[%c0_1, %c0_2] : memref<1x128xf32, #tpu.memory_space<vmem>>, vector<1x128xf32>
    %15 = vector.broadcast %14 : vector<1x128xf32> to vector<4x128xf32>
    %16 = arith.mulf %13, %15 : vector<4x128xf32>
    %c0_3 = arith.constant 0 : index
    %c0_4 = arith.constant 0 : index
    %17 = vector.load %arg3[%c0_3, %c0_4] : memref<1x128xf32, #tpu.memory_space<vmem>>, vector<1x128xf32>
    %18 = vector.broadcast %17 : vector<1x128xf32> to vector<4x128xf32>
    %19 = arith.addf %16, %18 : vector<4x128xf32>
    %20 = math.sin %19 : vector<4x128xf32>
    %c0_5 = arith.constant 0 : index
    %c0_6 = arith.constant 0 : index
    %21 = vector.load %arg4[%c0_5, %c0_6] : memref<4x128xf32, #tpu.memory_space<vmem>>, vector<4x128xf32>
    tpu.vector_store %arg4[%c0_5, %c0_6], %20 {strides = array<i32>} : memref<4x128xf32, #tpu.memory_space<vmem>>, vector<4x128xf32>,
    return
  }
  func.func @transform_0(%arg0: i32) -> (i32, i32) {
    %c0_i32 = arith.constant 0 : i32
    %c0_i32_0 = arith.constant 0 : i32
    return %arg0, %c0_i32 : i32, i32
  }
  func.func @transform_1(%arg0: i32) -> (i32, i32) {
    %c0_i32 = arith.constant 0 : i32
    %c0_i32_0 = arith.constant 0 : i32
    %c0_i32_1 = arith.constant 0 : i32
    return %c0_i32, %c0_i32_0 : i32, i32
  }
  func.func @transform_2(%arg0: i32) -> (i32, i32) {
    %c0_i32 = arith.constant 0 : i32
    %c0_i32_0 = arith.constant 0 : i32
    %c0_i32_1 = arith.constant 0 : i32
    return %c0_i32, %c0_i32_0 : i32, i32
  }
  func.func @transform_3(%arg0: i32) -> (i32, i32) {
    %c0_i32 = arith.constant 0 : i32
    %c0_i32_0 = arith.constant 0 : i32
    return %arg0, %c0_i32 : i32, i32
  }
}

</mosaic_0001>

<bundles_post_ra>
// kernel: tpu_custom_call.1
= control target key start
LH: loop header
LB: loop body
LE: loop exit
PB: predicated region body
PF: predicated region fallthrough
CT: control target
= control target key end

     0   :  { %8 = vsyncpa [#allocation3], 0  ;;  %s349_s0 = inlined_call_operand.hbm [shape: f32[4,4], index: 0, kind: input, shape index: {}]   ;;  %s350_s1 = inlined_call_operand.vmem [shape: f32[1,128], index: 1, kind: input, shape index: {}]   ;;  %s351_s2 = inlined_call_operand.vmem [shape: f32[1,128], index: 2, kind: input, shape index: {}]   ;;  %s352_s3 = inlined_call_operand.hbm [shape: f32[4,128], index: 3, kind: output, shape index: {}]  }
   0x1   :  { %9 = vsyncpa [#allocation4], 0  ;;  %s266_s12 = smov [#allocation2]   ;;  %s218_s16 = scalar_lea.hbm %s349_s0, 64 }
   0x2   :  { %s16_s13 = sshll.u32 %s266_s12, 4  ;;  %p219_p0 = scmp.ne.s32.totalorder %s349_s0, %s218_s16  ;;  %s17_s13 = int_to_ptr.vmem [resolvable:$true] %s16_s13 }
   0x3   :  { %p222_p1 = scmp.lt.u32.totalorder %s218_s16, %s349_s0 }
   0x5   :  { %p224_p2 = pnand %p222_p1, %p219_p0 }
   0x7   :  { %227 = shalt.err (!%p224_p2)
}
   0x8   :  { %s228_s21 = scalar_lea.vmem %s17_s13, 64  ;;  %p233_p4 = scmp.lt.s32.totalorder %s17_s13, %s17_s13 }
   0x9   :  { %p229_p3 = scmp.ne.s32.totalorder %s17_s13, %s228_s21  ;;  %p234_p5 = scmp.lt.s32.totalorder %s228_s21, %s228_s21 }
   0xb   :  { %p235_p6 = por %p234_p5, %p233_p4 }
   0xd   :  { %p236_p7 = pnand %p235_p6, %p229_p3 }
   0xf   :  { %239 = shalt.err (!%p236_p7)
}
  0x10   :  { %19 = dma.hbm_to_vmem [thread:$0]  %s349_s0, 64, %s17_s13, [#allocation3]  }
  0x11   :  { %262 = dma.done.wait [#allocation3], 64  }
  0x12   :  { %263 = vsyncadd [#allocation3], 4294967232  ;;  %v267_v0 = vmov 0   ;;  %v268_v1 = vmov 2   ;;  %v27_v2 = vld [vmem:[#allocation2] sm:$0xf] }
  0x13   :  { %209 = vset.pattern.permute.xlu0 %v267_v0  ;;  %211 = vset.pattern.permute.xlu1 %v268_v1  ;;  %v269_v3 = vmov 1   ;;  %v270_v4 = vmov 3   ;;  %vm45_vm0 = vcmask 261120   ;;  %vm47_vm1 = vcmask 523264   ;;  %v187_v10 = vld [vmem:[%s350_s1] ss:$0 sm:$0xff] }
  0x14   :  { %30 = vperm.xlu0 %209, %v27_v2   ;;  %38 = vperm.xlu1 %211, %v27_v2   ;;  %vm49_vm2 = vcmask 785408   ;;  %v188_v12 = vld [vmem:[%s351_s2] ss:$0 sm:$0xff]  ;;  %v271_v26 = vmov 683565275   ;;  %s277_s1 = smov [#allocation5]  }
  0x15   :  { %v272_v28 = vmov 2475754826   ;;  %v273_v31 = vmov 2131351028   ;;  %v274_v34 = vmov 2102212464  }
  0x16   :  { %v275_v37 = vmov 920167782   ;;  %v276_v40 = vmov 1326507024   ;;  %s178_s2 = sshll.u32 %s277_s1, 4  ;;  %s179_s2 = int_to_ptr.vmem [resolvable:$true] %s178_s2 }
  0x17   :  { %s240_s27 = scalar_lea.vmem %s179_s2, 64  ;;  %p245_p9 = scmp.lt.s32.totalorder %s179_s2, %s179_s2 }
  0x18   :  { %210 = vset.pattern.permute.xlu0 %v269_v3  ;;  %212 = vset.pattern.permute.xlu1 %v270_v4  ;;  %p241_p8 = scmp.ne.s32.totalorder %s179_s2, %s240_s27  ;;  %p246_p10 = scmp.lt.s32.totalorder %s240_s27, %s240_s27 }
  0x19   :  { %34 = vperm.xlu0 %210, %v27_v2   ;;  %42 = vperm.xlu1 %212, %v27_v2  }
  0x1a   :  { %p247_p11 = por %p246_p10, %p245_p9 }
  0x1c   :  { %p248_p12 = pnand %p247_p11, %p241_p8 }
  0x1d   :  { %213 = vset.pattern.permute.xlu0 %v270_v4 }
  0x93   :  { %v31_v5 = vpop.permute.xlu0 %30  ;;  %v39_v6 = vpop.permute.xlu1 %38 }
  0x98   :  { %v35_v7 = vpop.permute.xlu0 %34  ;;  %v43_v8 = vpop.permute.xlu1 %42 }
  0x99   :  { %v46_v9 = vsel %vm45_vm0, %v31_v5, %v35_v7 }
  0x9a   :  { %v48_v11 = vsel %vm47_vm1, %v46_v9, %v39_v6 }
  0x9b   :  { %v50_v13 = vsel %vm49_vm2, %v48_v11, %v43_v8 }
  0x9c   :  { %v58_v14 = vmul.f32 %v187_v10, %v50_v13 }
  0x9e   :  { %v316_v15 = vadd.f32 %v188_v12, %v58_v14 }
  0xa0   :  { %v70_v16 = vand.u32 2139095040, %v316_v15  ;;  %v67_v20 = vand.u32 2147483647, %v316_v15  ;;  %vm69_vm10 = vcmp.lt.s32.totalorder %v316_v15, 0  ;;  %vm159_vm15 = vweird.f32 %v316_v15 }
  0xa2   :  { %v71_v17 = vshrl.u32 %v70_v16, 23  ;;  %v74_v24 = vand.u32 8388607, %v67_v20  ;;  %vm68_vm11 = vcmp.le.f32.partialorder %v67_v20, 0.7853982 }
  0xa4   :  { %v189_v18 = vadd.s32 4294967169, %v71_v17  ;;  %v75_v42 = vor.u32 8388608, %v74_v24 }
  0xa6   :  { %v77_v19 = vadd.s32 1, %v189_v18  ;;  %v115_v56 = vshll.u32 %v75_v42, 8 }
  0xa8   :  { %vm78_vm3 = vcmp.gt.s32.totalorder %v77_v19, 0 }
  0xa9   :  { %v79_v21 = vsel %vm78_vm3, %v77_v19, 0 }
  0xaa   :  { %v81_v22 = vand.u32 31, %v79_v21  ;;  %v80_v25 = vshrl.u32 %v79_v21, 5 }
  0xac   :  { %v82_v23 = vsub.s32 32, %v81_v22  ;;  %v84_v27 = vshll.u32 %v271_v26, %v81_v22  ;;  %v87_v29 = vshll.u32 %v272_v28, %v81_v22  ;;  %v90_v33 = vshll.u32 %v273_v31, %v81_v22 }
  0xad   :  { %v93_v36 = vshll.u32 %v274_v34, %v81_v22  ;;  %v96_v39 = vshll.u32 %v275_v37, %v81_v22  ;;  %vm99_vm4 = vcmp.lt.s32.totalorder %v80_v25, 1  ;;  %vm102_vm5 = vcmp.lt.s32.totalorder %v80_v25, 4 }
  0xae   :  { %v85_v30 = vshrl.u32 %v272_v28, %v82_v23  ;;  %v88_v32 = vshrl.u32 %v273_v31, %v82_v23  ;;  %v91_v35 = vshrl.u32 %v274_v34, %v82_v23  ;;  %v94_v38 = vshrl.u32 %v275_v37, %v82_v23 }
  0xaf   :  { %v97_v41 = vshrl.u32 %v276_v40, %v82_v23  ;;  %v83_v51 = vshrl.u32 %v271_v26, %v82_v23  ;;  %vm101_vm6 = vcmp.lt.s32.totalorder %v80_v25, 3  ;;  %vm100_vm7 = vcmp.lt.s32.totalorder %v80_v25, 2 }
  0xb0   :  { %v86_v43 = vor.u32 %v85_v30, %v84_v27  ;;  %v89_v44 = vor.u32 %v88_v32, %v87_v29  ;;  %v92_v45 = vor.u32 %v91_v35, %v90_v33  ;;  %v95_v46 = vor.u32 %v94_v38, %v93_v36 }
  0xb1   :  { %v98_v47 = vor.u32 %v97_v41, %v96_v39 }
  0xb2   :  { %v104_v48 = vsel %vm102_vm5, %v92_v45, 2102212464  ;;  %v107_v49 = vsel %vm99_vm4, %v86_v43, %v89_v44  ;;  %v111_v50 = vsel %vm99_vm4, %v89_v44, %v92_v45  ;;  %v108_v52 = vsel %vm102_vm5, %v95_v46, 920167782 }
  0xb3   :  { %v112_v53 = vsel %vm102_vm5, %v98_v47, 1326507024  ;;  %v109_v54 = vsel %vm101_vm6, %v92_v45, %v108_v52  ;;  %v103_v57 = vsel %vm99_vm4, %v83_v51, %v86_v43  ;;  %v105_v58 = vsel %vm101_vm6, %v89_v44, %v104_v48 }
  0xb4   :  { %v113_v55 = vsel %vm101_vm6, %v95_v46, %v112_v53  ;;  %v110_v59 = vsel %vm100_vm7, %v107_v49, %v109_v54  ;;  %v106_v1 = vsel %vm100_vm7, %v103_v57, %v105_v58 }
  0xb5   :  { %v114_v60 = vsel %vm100_vm7, %v111_v50, %v113_v55  ;;  %v325_v63 = vmul.u32.u64.low %v115_v56, %v110_v59  ;;  %v326_v0 = vmul.u32.u64.high %v115_v56, %v110_v59, %v325_v63  ;;  %v122_v3 = vmul.u32 %v115_v56, %v106_v1 }
  0xb6   :  { %v322_v61 = vmul.u32.u64.low %v115_v56, %v114_v60  ;;  %v323_v62 = vmul.u32.u64.high %v115_v56, %v114_v60, %v322_v61 }
  0xb7   :  { %v125_v2 = vadd.s32 1, %v326_v0 }
  0xb8   :  { %vm124_vm8 = vc.u32 %v323_v62, %v325_v63  ;;  %v123_v16 = vadd.s32 %v325_v63, %v323_v62 }
  0xb9   :  { %v126_v4 = vsel %vm124_vm8, %v125_v2, %v326_v0 }
  0xba   :  { %v127_v5 = vadd.s32 %v126_v4, %v122_v3 }
  0xbc   :  { %v128_v6 = vadd.s32 536870912, %v127_v5 }
  0xbe   :  { %v129_v7 = vshrl.u32 %v128_v6, 30 }
  0xc0   :  { %v130_v8 = vshll.u32 %v129_v7, 30  ;;  %v153_v29 = vsub.s32 4, %v129_v7 }
  0xc2   :  { %v131_v9 = vsub.s32 %v127_v5, %v130_v8  ;;  %v154_v32 = vsel %vm69_vm10, %v153_v29, %v129_v7 }
  0xc3   :  { %v156_v34 = vsel %vm68_vm11, 0, %v154_v32 }
  0xc4   :  { %v133_v10 = vsub.s32 0, %v131_v9  ;;  %v160_v35 = vadd.s32 3, %v156_v34 }
  0xc6   :  { %v190_v11 = vmin.u32 %v133_v10, %v131_v9  ;;  %v161_v36 = vand.u32 3, %v160_v35 }
  0xc8   :  { %v135_v12 = vclz %v190_v11  ;;  %vm166_vm12 = vcmp.eq.s32.totalorder %v161_v36, 2  ;;  %vm163_vm13 = vcmp.eq.s32.totalorder %v161_v36, 0  ;;  %vm162_vm14 = vcmp.lt.s32.totalorder %v161_v36, 2 }
  0xca   :  { %v191_v13 = vadd.s32 4294967294, %v135_v12 }
  0xcc   :  { %vm192_vm9 = vcmp.lt.s32.totalorder %v191_v13, 0 }
  0xcd   :  { %v138_v14 = vsel %vm192_vm9, 0, %v191_v13 }
  0xce   :  { %v139_v17 = vsub.s32 32, %v138_v14  ;;  %v143_v18 = vsub.s32 4294967266, %v138_v14  ;;  %v140_v19 = vshll.u32 %v131_v9, %v138_v14 }
  0xd0   :  { %v141_v21 = vshrl.u32 %v123_v16, %v139_v17  ;;  %v144_v22 = vadd.s32 127, %v143_v18 }
  0xd2   :  { %v142_v23 = vor.u32 %v141_v21, %v140_v19  ;;  %v145_v24 = vshll.u32 %v144_v22, 23 }
  0xd4   :  { %v146_v25 = vor.u32 4788187, %v145_v24  ;;  %v149_v27 = vcvt.s32.f32 %v142_v23 }
  0xd6   :  { %v147_v26 = vand.u32 2147483647, %v146_v25 }
  0xd8   :  { %v150_v28 = vmul.f32 %v149_v27, %v147_v26 }
  0xda   :  { %v151_v30 = vxor.u32 2147483648, %v150_v28 }
  0xdc   :  { %v152_v31 = vsel %vm69_vm10, %v151_v30, %v150_v28 }
  0xdd   :  { %v155_v33 = vsel %vm68_vm11, %v316_v15, %v152_v31 }
  0xde   :  { %214 = vcosq.f32 %v155_v33 }
  0xdf   :  { %216 = vsinq.f32 %v155_v33 }
  0xe8   :  { %v215_v37 = vpop.eup %214 }
  0xe9   :  { %v217_v38 = vpop.eup %216  ;;  %v167_v39 = vxor.u32 2147483648, %v215_v37 }
  0xea   :  { %v164_v40 = vxor.u32 2147483648, %v217_v38 }
  0xeb   :  { %v168_v41 = vsel %vm166_vm12, %v167_v39, %v217_v38 }
  0xec   :  { %v165_v20 = vsel %vm163_vm13, %v215_v37, %v164_v40 }
  0xed   :  { %v169_v42 = vsel %vm162_vm14, %v165_v20, %v168_v41 }
  0xee   :  { %v170_v43 = vsel %vm159_vm15, nan, %v169_v42 }
  0xef   :  { %171 = vst [vmem:[#allocation5] sm:$0xf] %v170_v43 }
  0xf0   :  { %251 = shalt.err (!%p248_p12)
}
  0xf1   :  { %s252_s30 = scalar_lea.hbm %s352_s3, 64 }
  0xf2   :  { %p253_p13 = scmp.ne.s32.totalorder %s352_s3, %s252_s30  ;;  %p256_p0 = scmp.lt.u32.totalorder %s252_s30, %s352_s3 }
  0xf4   :  { %p258_p1 = pnand %p256_p0, %p253_p13 }
  0xf6   :  { %261 = shalt.err (!%p258_p1)
}
  0xf7   :  { %181 = dma.vmem_to_hbm [thread:$0]  %s179_s2, 64, %s352_s3, [#allocation4]  }
  0xf8   :  { %264 = dma.done.wait [#allocation4], 64  }
  0xf9   :  { %265 = vsyncadd [#allocation4], 4294967232 }
  0xfa   :  { %185 = vsyncpa [#allocation3], 1 }
  0xfb   :  { %186 = vsyncpa [#allocation4], 1 }

</bundles_post_ra>
